<compile_context>
chip_gen: v5e
topology: v5e:2x2
jax: 0.10.0
libtpu: 0.0.40
codegen_flags: <defaults>
</compile_context>

<pallas_src>
import numpy as np
import jax
import jax.numpy as jnp
from jax import lax
from jax.experimental import pallas as pl
from jax.experimental.pallas import tpu as pltpu


def _round_up(x, m):
    return ((x + m - 1) // m) * m


def _sublane(dtype):
    """Packed sublane multiple for the compute dtype (8/16/32 for 4/2/1 B)."""
    return {4: 8, 2: 16, 1: 32}.get(np.dtype(dtype).itemsize, 8)


# Probe (jax-version dependent) support for single-buffering grid-invariant
# blocks.  Falls back to default double-buffering if unavailable.
try:
    pl.BlockSpec((8, 128), lambda i: (0, 0), pipeline_mode=pl.Buffered(1))
    _HAS_SINGLE_BUFFER = True
except Exception:  # pragma: no cover - older jax
    _HAS_SINGLE_BUFFER = False


def _const_spec(shape, index_map):
    """BlockSpec for a grid-invariant input; single-buffered when supported."""
    if _HAS_SINGLE_BUFFER:
        return pl.BlockSpec(shape, index_map, pipeline_mode=pl.Buffered(1))
    return pl.BlockSpec(shape, index_map)


def _vmem_budget_bytes():
    """Usable scoped-VMEM budget: physical capacity minus ~20% headroom."""
    cap = None
    try:
        cap = getattr(pltpu.get_tpu_info(), "vmem_capacity_bytes", None)
    except Exception:
        cap = None
    if not cap:
        cap = 64 << 20  # conservative fallback: fits every TPU generation
    return int(cap * 0.80)


def _resident_need_bytes(tm, D_pad, H_pad, hc, isz, osz, wsz, wbuf):
    return int(2 * tm * D_pad * isz            # x tiles (double-buffered)
               + 2 * tm * D_pad * osz          # out tiles (double-buffered)
               + wbuf * 2 * D_pad * H_pad * wsz  # resident W1 + W2
               + wbuf * (H_pad + D_pad) * 4      # resident biases (f32)
               + tm * D_pad * 4                  # f32 accumulator scratch
               + tm * hc * 4)                    # live h chunk


def _stream_need_bytes(tm, D_pad, hc, isz, osz, wsz, wbuf):
    return int(2 * tm * D_pad * isz
               + 2 * tm * D_pad * osz
               + 2 * 2 * D_pad * hc * wsz        # W1/W2 chunk tiles (2-buffered)
               + 2 * hc * 4 + wbuf * D_pad * 4   # b1 chunk tiles + b2
               + tm * D_pad * 4                  # f32 accumulator scratch
               + tm * hc * 4)                    # live h chunk


# ---------------------------------------------------------------------------
# Kernels
# ---------------------------------------------------------------------------

def _make_resident_kernel(n_chunks):
    """Resident weights: fori_loop over hidden chunks, f32 VMEM accumulator."""

    def kernel(x_ref, w1_ref, b1_ref, w2_ref, b2_ref, o_ref, acc_ref):
        # x_ref: (tm, D_pad); w1_ref: (n_chunks, D_pad, hc);
        # b1_ref: (n_chunks, 1, hc); w2_ref: (n_chunks, hc, D_pad);
        # b2_ref: (1, D_pad); o_ref: (tm, D_pad); acc_ref: (tm, D_pad) f32.
        acc_ref[...] = jnp.zeros_like(acc_ref)

        def body(c, carry):
            h = jnp.dot(x_ref[...], w1_ref[c],
                        preferred_element_type=jnp.float32)
            h = jnp.maximum(h + b1_ref[c], 0.0)          # Linear1 + bias + ReLU
            # Dropout: eval-mode identity.
            acc_ref[...] += jnp.dot(h.astype(w2_ref.dtype), w2_ref[c],
                                    preferred_element_type=jnp.float32)
            return carry

        lax.fori_loop(0, n_chunks, body, 0, unroll=(n_chunks <= 8))
        o_ref[...] = (acc_ref[...] + b2_ref[...]).astype(o_ref.dtype)

    return kernel


def _streaming_kernel(x_ref, w1_ref, b1_ref, w2_ref, b2_ref, o_ref, acc_ref):
    """Weight streaming: hidden chunk axis is the last ('arbitrary') grid dim."""
    k = pl.program_id(1)

    @pl.when(k == 0)
    def _():
        acc_ref[...] = jnp.zeros_like(acc_ref)

    h = jnp.dot(x_ref[...], w1_ref[0], preferred_element_type=jnp.float32)
    h = jnp.maximum(h + b1_ref[0], 0.0)                  # Linear1 + bias + ReLU
    # Dropout: eval-mode identity.
    acc_ref[...] += jnp.dot(h.astype(w2_ref.dtype), w2_ref[0],
                            preferred_element_type=jnp.float32)

    @pl.when(k == pl.num_programs(1) - 1)
    def _():
        o_ref[...] = (acc_ref[...] + b2_ref[...]).astype(o_ref.dtype)


# ---------------------------------------------------------------------------
# Parameter preparation (hoisted out of the per-call hot path)
# ---------------------------------------------------------------------------

def prepare_ffn_params(w1, b1, w2, b2, *, compute_dtype=jnp.bfloat16,
                       h_chunk=512):
    """Pad, cast and chunk the FFN weights once.

    w1: (D, H), b1: (H,) or (1, H), w2: (H, D), b2: (D,) or (1, D).
    """
    D, H = w1.shape
    assert w2.shape == (H, D), "w2 must be (dim_hidden, dim_vector)"
    compute_dtype = jnp.dtype(compute_dtype)

    D_pad = _round_up(D, 128)
    hc = max(128, min(_round_up(h_chunk, 128), _round_up(H, 128)))
    H_pad = _round_up(H, hc)
    n_chunks = H_pad // hc

    w1p = jnp.pad(w1.astype(compute_dtype), ((0, D_pad - D), (0, H_pad - H)))
    w2p = jnp.pad(w2.astype(compute_dtype), ((0, H_pad - H), (0, D_pad - D)))
    b1p = jnp.pad(jnp.reshape(b1, (1, H)).astype(jnp.float32),
                  ((0, 0), (0, H_pad - H)))
    b2p = jnp.pad(jnp.reshape(b2, (1, D)).astype(jnp.float32),
                  ((0, 0), (0, D_pad - D)))

    # Chunked layouts: leading axis indexes the hidden-dim chunk.
    w1c = jnp.transpose(w1p.reshape(D_pad, n_chunks, hc), (1, 0, 2))
    b1c = b1p.reshape(n_chunks, 1, hc)
    w2c = w2p.reshape(n_chunks, hc, D_pad)

    return dict(w1c=w1c, b1c=b1c, w2c=w2c, b2p=b2p,
                D=D, H=H, D_pad=D_pad, H_pad=H_pad,
                h_chunk=hc, n_chunks=n_chunks, compute_dtype=compute_dtype)


# ---------------------------------------------------------------------------
# Forward pass
# ---------------------------------------------------------------------------

def feedforward(x, params, *, tm=512, force_stream=False):
    """x: [batch, seq, D] -> [batch, seq, D], params from prepare_ffn_params."""
    batch, seq, D = x.shape
    assert D == params["D"], "x feature dim must match prepared params"
    D_pad, H_pad = params["D_pad"], params["H_pad"]
    hc, n_chunks = params["h_chunk"], params["n_chunks"]
    cdtype = params["compute_dtype"]
    out_dtype = x.dtype
    M = batch * seq

    sub = _sublane(cdtype)
    isz = np.dtype(cdtype).itemsize
    osz = np.dtype(out_dtype).itemsize
    wsz = isz
    wbuf = 1 if _HAS_SINGLE_BUFFER else 2
    budget = _vmem_budget_bytes()

    # Row tile: large (feeds the MXU, amortizes ~0.35us per grid step) and a
    # multiple of the packed-sublane count for the compute dtype.
    tm_eff = max(sub, min(_round_up(tm, sub), _round_up(M, sub)))
    # v7x megacore: keep >= 2 steps along the parallel M axis when M allows it
    # so both TensorCores get work (harmless on single-core v5e/v6e).
    while _round_up(M, tm_eff) // tm_eff < 2 and tm_eff > sub:
        tm_eff = max(sub, _round_up(tm_eff // 2, sub))

    use_stream = force_stream or (
        _resident_need_bytes(tm_eff, D_pad, H_pad, hc, isz, osz, wsz, wbuf)
        * 1.25 > budget)
    if use_stream:
        # Shrink the row tile until the per-step streaming working set fits.
        while (tm_eff > sub and
               _stream_need_bytes(tm_eff, D_pad, hc, isz, osz, wsz, wbuf)
               * 1.25 > budget):
            tm_eff = max(sub, _round_up(tm_eff // 2, sub))

    M_pad = _round_up(M, tm_eff)
    x2d = x.reshape(M, D).astype(cdtype)
    if M_pad != M or D_pad != D:
        x2d = jnp.pad(x2d, ((0, M_pad - M), (0, D_pad - D)))

    w1c, b1c, w2c, b2p = (params["w1c"], params["b1c"],
                          params["w2c"], params["b2p"])

    if not use_stream:
        need = _resident_need_bytes(tm_eff, D_pad, H_pad, hc, isz, osz, wsz,
                                    wbuf)
        vmem_limit = int(min(budget, max(32 << 20, int(need * 1.4))))
        out2d = pl.pallas_call(
            _make_resident_kernel(n_chunks),
            out_shape=jax.ShapeDtypeStruct((M_pad, D_pad), out_dtype),
            grid_spec=pltpu.PrefetchScalarGridSpec(
                num_scalar_prefetch=0,
                grid=(M_pad // tm_eff,),
                in_specs=[
                    pl.BlockSpec((tm_eff, D_pad), lambda i: (i, 0)),      # x
                    _const_spec((n_chunks, D_pad, hc), lambda i: (0, 0, 0)),  # W1
                    _const_spec((n_chunks, 1, hc), lambda i: (0, 0, 0)),      # b1
                    _const_spec((n_chunks, hc, D_pad), lambda i: (0, 0, 0)),  # W2
                    _const_spec((1, D_pad), lambda i: (0, 0)),                # b2
                ],
                out_specs=pl.BlockSpec((tm_eff, D_pad), lambda i: (i, 0)),
                scratch_shapes=[pltpu.VMEM((tm_eff, D_pad), jnp.float32)],
            ),
            compiler_params=pltpu.CompilerParams(
                dimension_semantics=("parallel",),
                vmem_limit_bytes=vmem_limit,
            ),
        )(x2d, w1c, b1c, w2c, b2p)
    else:
        need = _stream_need_bytes(tm_eff, D_pad, hc, isz, osz, wsz, wbuf)
        vmem_limit = int(min(budget, max(32 << 20, int(need * 1.4))))
        out2d = pl.pallas_call(
            _streaming_kernel,
            out_shape=jax.ShapeDtypeStruct((M_pad, D_pad), out_dtype),
            grid_spec=pltpu.PrefetchScalarGridSpec(
                num_scalar_prefetch=0,
                grid=(M_pad // tm_eff, n_chunks),
                in_specs=[
                    pl.BlockSpec((tm_eff, D_pad), lambda i, k: (i, 0)),       # x
                    pl.BlockSpec((1, D_pad, hc), lambda i, k: (k, 0, 0)),     # W1
                    pl.BlockSpec((1, 1, hc), lambda i, k: (k, 0, 0)),         # b1
                    pl.BlockSpec((1, hc, D_pad), lambda i, k: (k, 0, 0)),     # W2
                    _const_spec((1, D_pad), lambda i, k: (0, 0)),             # b2
                ],
                out_specs=pl.BlockSpec((tm_eff, D_pad), lambda i, k: (i, 0)),
                scratch_shapes=[pltpu.VMEM((tm_eff, D_pad), jnp.float32)],
            ),
            compiler_params=pltpu.CompilerParams(
                dimension_semantics=("parallel", "arbitrary"),
                vmem_limit_bytes=vmem_limit,
            ),
        )(x2d, w1c, b1c, w2c, b2p)

    return out2d[:M, :D].reshape(batch, seq, D)


def feedforward_raw(x, w1, b1, w2, b2, *, compute_dtype=jnp.bfloat16, **kw):
    """Convenience: prepare (pad/cast/chunk) per call, then run the kernel."""
    return feedforward(x, prepare_ffn_params(w1, b1, w2, b2,
                                             compute_dtype=compute_dtype), **kw)


def init_params(key, dim_vector, dim_hidden, dtype=jnp.float32):
    """Deterministic init mimicking nn.Linear (uniform +-1/sqrt(fan_in)).

    Weights are stored as (in_features, out_features)."""
    k1, k2, k3, k4 = jax.random.split(key, 4)
    bound1 = 1.0 / (dim_vector ** 0.5)
    bound2 = 1.0 / (dim_hidden ** 0.5)
    w1 = jax.random.uniform(k1, (dim_vector, dim_hidden), dtype, -bound1, bound1)
    b1 = jax.random.uniform(k2, (1, dim_hidden), dtype, -bound1, bound1)
    w2 = jax.random.uniform(k3, (dim_hidden, dim_vector), dtype, -bound2, bound2)
    b2 = jax.random.uniform(k4, (1, dim_vector), dtype, -bound2, bound2)
    return w1, b1, w2, b2


if __name__ == "__main__":
    batch, seq, dim_vector, dim_hidden = 2, 8, 32, 64

    key = jax.random.PRNGKey(0)
    kx, kp = jax.random.split(key)
    x = jax.random.normal(kx, (batch, seq, dim_vector), dtype=jnp.float32)
    w1, b1, w2, b2 = init_params(kp, dim_vector, dim_hidden)

    # Pure-JAX reference (eval-mode dropout == identity).
    ref = jnp.maximum(x.reshape(-1, dim_vector) @ w1 + b1, 0.0) @ w2 + b2
    ref = ref.reshape(batch, seq, dim_vector)

    # 1) f32 compute, resident-weight path (exact).
    p32 = prepare_ffn_params(w1, b1, w2, b2, compute_dtype=jnp.float32)
    out = jax.block_until_ready(feedforward(x, p32))
    assert out.shape == (batch, seq, dim_vector)
    assert jnp.allclose(out, ref, atol=1e-5, rtol=1e-5)

    # 2) bf16 compute (default), f32 MXU accumulation — looser tolerance.
    pbf = prepare_ffn_params(w1, b1, w2, b2)  # bf16 by default
    out_bf = jax.block_until_ready(feedforward(x, pbf))
    assert out_bf.shape == (batch, seq, dim_vector)
    assert jnp.allclose(out_bf.astype(jnp.float32), ref, atol=1e-1, rtol=1e-1)

    # 3) Weight-streaming path (hidden-dim reduction grid axis) also runs.
    out_st = jax.block_until_ready(feedforward(x, p32, force_stream=True))
    assert jnp.allclose(out_st, ref, atol=1e-5, rtol=1e-5)

    print("KERNEL_OK")
</pallas_src>

<mosaic_0001>
module attributes {stable_mosaic.version = 11 : i64} {
  func.func @kernel(%arg0: i32, %arg1: memref<8x128xf32, #tpu.memory_space<vmem>>, %arg2: memref<1x128x128xf32, #tpu.memory_space<vmem>>, %arg3: memref<1x1x128xf32, #tpu.memory_space<vmem>>, %arg4: memref<1x128x128xf32, #tpu.memory_space<vmem>>, %arg5: memref<1x128xf32, #tpu.memory_space<vmem>>, %arg6: memref<8x128xf32, #tpu.memory_space<vmem>>, %arg7: memref<8x128xf32, #tpu.memory_space<vmem>>) attributes {dimension_semantics = [#tpu.dimension_semantics<parallel>], iteration_bounds = array<i64: 2>, scalar_prefetch = 0 : i64, scratch_operands = 1 : i64, tpu.core_type = #tpu.core_type<tc>, window_params = [{transform_indices = @transform_0, window_bounds = array<i64: 8, 128>}, {pipeline_mode = #tpu.pipeline_mode<synchronous>, transform_indices = @transform_1, window_bounds = array<i64: 1, 128, 128>}, {pipeline_mode = #tpu.pipeline_mode<synchronous>, transform_indices = @transform_2, window_bounds = array<i64: 1, 1, 128>}, {pipeline_mode = #tpu.pipeline_mode<synchronous>, transform_indices = @transform_3, window_bounds = array<i64: 1, 128, 128>}, {pipeline_mode = #tpu.pipeline_mode<synchronous>, transform_indices = @transform_4, window_bounds = array<i64: 1, 128>}, {transform_indices = @transform_5, window_bounds = array<i64: 8, 128>}]} {
    %cst = arith.constant 0.000000e+00 : f32
    %0 = vector.broadcast %cst : f32 to vector<8x128xf32>
    %c0 = arith.constant 0 : index
    %c0_0 = arith.constant 0 : index
    %1 = vector.load %arg7[%c0, %c0_0] : memref<8x128xf32, #tpu.memory_space<vmem>>, vector<8x128xf32>
    tpu.vector_store %arg7[%c0, %c0_0], %0 {strides = array<i32>} : memref<8x128xf32, #tpu.memory_space<vmem>>, vector<8x128xf32>,
    %c0_i32 = arith.constant 0 : i32
    %c0_1 = arith.constant 0 : index
    %c0_2 = arith.constant 0 : index
    %2 = vector.load %arg1[%c0_1, %c0_2] : memref<8x128xf32, #tpu.memory_space<vmem>>, vector<8x128xf32>
    %3 = arith.index_cast %c0_i32 : i32 to index
    %c0_3 = arith.constant 0 : index
    %c0_4 = arith.constant 0 : index
    %4 = vector.load %arg2[%3, %c0_3, %c0_4] : memref<1x128x128xf32, #tpu.memory_space<vmem>>, vector<1x128x128xf32>
    %5 = vector.shape_cast %4 : vector<1x128x128xf32> to vector<128x128xf32>
    %cst_5 = arith.constant dense<0.000000e+00> : vector<8x128xf32>
    %6 = tpu.matmul %2, %5, %cst_5 {dimension_numbers = #tpu.dot_dimension_numbers<[1], [0], [0], [1], [0, 0, 1, 1], [], []>} : vector<8x128xf32>, vector<128x128xf32>, vector<8x128xf32> -> vector<8x128xf32>
    %7 = arith.index_cast %c0_i32 : i32 to index
    %c0_6 = arith.constant 0 : index
    %c0_7 = arith.constant 0 : index
    %8 = vector.load %arg3[%7, %c0_6, %c0_7] : memref<1x1x128xf32, #tpu.memory_space<vmem>>, vector<1x1x128xf32>
    %9 = vector.shape_cast %8 : vector<1x1x128xf32> to vector<1x128xf32>
    %10 = vector.broadcast %9 : vector<1x128xf32> to vector<8x128xf32>
    %11 = arith.addf %6, %10 : vector<8x128xf32>
    %cst_8 = arith.constant 0.000000e+00 : f32
    %12 = vector.broadcast %cst_8 : f32 to vector<8x128xf32>
    %13 = arith.maximumf %11, %12 : vector<8x128xf32>
    %c0_9 = arith.constant 0 : index
    %c0_10 = arith.constant 0 : index
    %14 = vector.load %arg7[%c0_9, %c0_10] : memref<8x128xf32, #tpu.memory_space<vmem>>, vector<8x128xf32>
    %15 = arith.index_cast %c0_i32 : i32 to index
    %c0_11 = arith.constant 0 : index
    %c0_12 = arith.constant 0 : index
    %16 = vector.load %arg4[%15, %c0_11, %c0_12] : memref<1x128x128xf32, #tpu.memory_space<vmem>>, vector<1x128x128xf32>
    %17 = vector.shape_cast %16 : vector<1x128x128xf32> to vector<128x128xf32>
    %cst_13 = arith.constant dense<0.000000e+00> : vector<8x128xf32>
    %18 = tpu.matmul %13, %17, %cst_13 {dimension_numbers = #tpu.dot_dimension_numbers<[1], [0], [0], [1], [0, 0, 1, 1], [], []>} : vector<8x128xf32>, vector<128x128xf32>, vector<8x128xf32> -> vector<8x128xf32>
    %19 = arith.addf %14, %18 : vector<8x128xf32>
    %c0_14 = arith.constant 0 : index
    %c0_15 = arith.constant 0 : index
    %20 = vector.load %arg7[%c0_14, %c0_15] : memref<8x128xf32, #tpu.memory_space<vmem>>, vector<8x128xf32>
    tpu.vector_store %arg7[%c0_14, %c0_15], %19 {strides = array<i32>} : memref<8x128xf32, #tpu.memory_space<vmem>>, vector<8x128xf32>,
    %c1_i32 = arith.constant 1 : i32
    %c0_16 = arith.constant 0 : index
    %c0_17 = arith.constant 0 : index
    %21 = vector.load %arg7[%c0_16, %c0_17] : memref<8x128xf32, #tpu.memory_space<vmem>>, vector<8x128xf32>
    %c0_18 = arith.constant 0 : index
    %c0_19 = arith.constant 0 : index
    %22 = vector.load %arg5[%c0_18, %c0_19] : memref<1x128xf32, #tpu.memory_space<vmem>>, vector<1x128xf32>
    %23 = vector.broadcast %22 : vector<1x128xf32> to vector<8x128xf32>
    %24 = arith.addf %21, %23 : vector<8x128xf32>
    %c0_20 = arith.constant 0 : index
    %c0_21 = arith.constant 0 : index
    %25 = vector.load %arg6[%c0_20, %c0_21] : memref<8x128xf32, #tpu.memory_space<vmem>>, vector<8x128xf32>
    tpu.vector_store %arg6[%c0_20, %c0_21], %24 {strides = array<i32>} : memref<8x128xf32, #tpu.memory_space<vmem>>, vector<8x128xf32>,
    return
  }
  func.func @transform_0(%arg0: i32) -> (i32, i32) {
    %c0_i32 = arith.constant 0 : i32
    %c0_i32_0 = arith.constant 0 : i32
    return %arg0, %c0_i32 : i32, i32
  }
  func.func @transform_1(%arg0: i32) -> (i32, i32, i32) {
    %c0_i32 = arith.constant 0 : i32
    %c0_i32_0 = arith.constant 0 : i32
    %c0_i32_1 = arith.constant 0 : i32
    %c0_i32_2 = arith.constant 0 : i32
    return %c0_i32, %c0_i32_0, %c0_i32_1 : i32, i32, i32
  }
  func.func @transform_2(%arg0: i32) -> (i32, i32, i32) {
    %c0_i32 = arith.constant 0 : i32
    %c0_i32_0 = arith.constant 0 : i32
    %c0_i32_1 = arith.constant 0 : i32
    %c0_i32_2 = arith.constant 0 : i32
    return %c0_i32, %c0_i32_0, %c0_i32_1 : i32, i32, i32
  }
  func.func @transform_3(%arg0: i32) -> (i32, i32, i32) {
    %c0_i32 = arith.constant 0 : i32
    %c0_i32_0 = arith.constant 0 : i32
    %c0_i32_1 = arith.constant 0 : i32
    %c0_i32_2 = arith.constant 0 : i32
    return %c0_i32, %c0_i32_0, %c0_i32_1 : i32, i32, i32
  }
  func.func @transform_4(%arg0: i32) -> (i32, i32) {
    %c0_i32 = arith.constant 0 : i32
    %c0_i32_0 = arith.constant 0 : i32
    %c0_i32_1 = arith.constant 0 : i32
    return %c0_i32, %c0_i32_0 : i32, i32
  }
  func.func @transform_5(%arg0: i32) -> (i32, i32) {
    %c0_i32 = arith.constant 0 : i32
    %c0_i32_0 = arith.constant 0 : i32
    return %arg0, %c0_i32 : i32, i32
  }
}

</mosaic_0001>

<bundles_post_ra>
// kernel: tpu_custom_call.1
= control target key start
LH: loop header
LB: loop body
LE: loop exit
PB: predicated region body
PF: predicated region fallthrough
CT: control target
= control target key end

     0   :  { %10 = vsyncpa [#allocation4], 0  ;;  %s910_s0 = inlined_call_operand.hbm [shape: f32[16,128], index: 0, kind: input, shape index: {}]   ;;  %s911_s1 = inlined_call_operand.hbm [shape: f32[1,128,128], index: 1, kind: input, shape index: {}]   ;;  %s912_s2 = inlined_call_operand.vmem [shape: f32[1,1,128], index: 2, kind: input, shape index: {}]   ;;  %s913_s3 = inlined_call_operand.hbm [shape: f32[1,128,128], index: 3, kind: input, shape index: {}]   ;;  %s914_s4 = inlined_call_operand.vmem [shape: f32[1,128], index: 4, kind: input, shape index: {}]   ;;  %s915_s5 = inlined_call_operand.hbm [shape: f32[16,128], index: 5, kind: output, shape index: {}]  }
   0x1   :  { %12 = vsyncpa [#allocation4 + $0x1], 0 }
   0x2   :  { %13 = vsyncpa [#allocation7], 0 }
   0x3   :  { %14 = vsyncpa [#allocation5], 0 }
   0x4   :  { %16 = vsyncpa [#allocation5 + $0x1], 0  ;;  %s752_s18 = smov 0   ;;  %s754_s19 = smov 0  }
   0x5   :  { %s756_s20 = smov 0   ;;  %s758_s21 = smov 0  }
   0x6 LB: > { %s174_s24 = sshll.u32 %s911_s1, 4  ;;  %s776_s25 = sadd.s32 4294967295, %s716_s21   ;;  %s716_s21 = sphi %s758_s21, %s926_s21   ;;  %s712_s20 = sphi %s756_s20, %s925_s20   ;;  %s708_s19 = sphi %s754_s19, %s924_s19   ;;  %s704_s18 = sphi %s752_s18, %s923_s18   ;;  %s175_s24 = int_to_ptr.hbm [resolvable:$true] %s174_s24 }
   0x7   : > { %p470_p0 = scmp.ge.s32.totalorder %s716_s21, 1  ;;  %p43_p1 = scmp.eq.s32.totalorder %s776_s25, 0 }
   0x8   : > { %p163_p2 = scmp.lt.s32.totalorder %s716_s21, 3  ;;  %s718_s27 = smov [#allocation6]  }
   0x9   : > { %s176_s28 = sshll.u32 %s718_s27, 4  ;;  %s191_s6 = sshll.u32 %s913_s3, 4  ;;  %s177_s28 = int_to_ptr.vmem [resolvable:$true] %s176_s28  ;;  %s192_s6 = int_to_ptr.hbm [resolvable:$true] %s191_s6 }
   0xa   : > { %p781_p3 = pnand %p470_p0, %p163_p2  ;;  %s719_s7 = smov [#allocation8]  }
   0xb   : > { %s193_s8 = sshll.u32 %s719_s7, 4  ;;  %s720_s9 = smov 128   ;;  %s194_s8 = int_to_ptr.vmem [resolvable:$true] %s193_s8 }
   0xc   : > { %p497_p4 = pneg %p781_p3  ;;  %s721_s10 = smov 8  }
   0xd   : > { %s469_s11 = sadd.s32 4294967294, %s716_s21   ;;  %s795_s12 = sadd.s32 1, %s716_s21  }
   0xe   : > { %p498_p6 = pnand %p497_p4, %p43_p1  ;;  %s26_s13 = ssub.s32 %s716_s21, %s795_s12 }
   0xf   : > { %s29_s14 = sadd.s32 1, %s712_s20  ;;  %p27_p7 = scmp.eq.s32.totalorder %s26_s13, 0 }
  0x10   : > { %500 = dma.hbm_to_vmem [thread:$0]  (!%p498_p6), %s175_s24, 2048, %s177_s28, [#allocation7], %s720_s9, %s720_s9, %s721_s10  }
  0x11   : > { %503 = dma.hbm_to_vmem [thread:$0]  (!%p498_p6), %s192_s6, 2048, %s194_s8, [#allocation7], %s720_s9, %s720_s9, %s721_s10  }
  0x12   : > { %p36_p8 = scmp.ne.s32.totalorder %s712_s20, %s708_s19  ;;  %p37_p9 = scmp.eq.s32.totalorder %s716_s21, 0 }
  0x13   : > { %p42_p10 = scmp.ne.s32.totalorder %s708_s19, %s704_s18  ;;  %p150_p13 = scmp.eq.s32.totalorder %s776_s25, 1 }
  0x14   : > { %s806_s15 = scalar_select %p27_p7, %s712_s20, %s29_s14  }
  0x15   : > { %p808_p11 = por %p37_p9, %p36_p8  ;;  %p814_p12 = por %p43_p1, %p42_p10 }
  0x16   : > { %p156_p0 = scmp.eq.s32.totalorder %s469_s11, 1  ;;  %p514_p2 = scmp.lt.s32.totalorder %s716_s21, 2 }
  0x17   : > { %s210_s22 = sand.u32 1, %s712_s20   ;;  %p821_p4 = por %p150_p13, %p36_p8 }
  0x18   : > { %p825_p6 = por %p156_p0, %p42_p10  ;;  %s474_s27 = sshll.u32 %s210_s22, 3 }
  0x19   : > { %s475_s28 = sshll.u32 %s716_s21, 3  ;;  %s214_s7 = scalar_lea.vmem [#allocation3], %s474_s27 }
  0x1a   : > { %s218_s6 = scalar_lea.hbm %s910_s0, %s475_s28  ;;  %s222_s8 = sshll.u32 %s214_s7, 4  ;;  %s223_s8 = int_to_ptr.vmem [resolvable:$true] %s222_s8 }
  0x1b   : > { %s220_s9 = sshll.u32 %s218_s6, 4  ;;  %p835_p7 = pnand %p514_p2, %p808_p11  ;;  %s221_s9 = int_to_ptr.hbm [resolvable:$true] %s220_s9 }
  0x1c   : > { %s211_s11 = scalar_lea.sflag [#allocation4], %s210_s22  ;;  %s616_s13 = sshra.s32 %s221_s9, 4  ;;  %s617_s13 = int_to_ptr.hbm [resolvable:$true] %s616_s13 }
  0x1d   : > { %s618_s14 = scalar_lea.hbm %s617_s13, 8  ;;  %p620_p9 = pneg %p835_p7 }
  0x1e   : > { %p619_p8 = scmp.ne.s32.totalorder %s617_s13, %s618_s14  ;;  %s623_s29 = scalar_lea.hbm %s910_s0, 16 }
  0x1f   : > { %p624_p11 = scmp.lt.s32.totalorder %s617_s13, %s910_s0  ;;  %p625_p0 = scmp.lt.s32.totalorder %s623_s29, %s618_s14 }
  0x20   : > { %p621_p10 = pnand %p620_p9, %p619_p8 }
  0x21   : > { %p626_p2 = por %p625_p0, %p624_p11 }
  0x22   : > { %p622_p13 = pneg %p621_p10 }
  0x24   : > { %p627_p5 = pnand %p626_p2, %p622_p13 }
  0x26   : > { %630 = shalt.err (!%p627_p5)
}
  0x27   : > { %507 = dma.hbm_to_vmem [thread:$0]  (!%p835_p7), %s221_s9, 128, %s223_s8, %s211_s11  }
  0x28   : > { %231 = sbr.rel (%p781_p3) target bundleno = 341 (0x155), region = 40  ;;  %s852_s22 = sand.u32 (!%p781_p3), 1, %s708_s19  }
  0x29   : > { %s477_s6 = sshll.u32 (!%p781_p3), %s852_s22, 3  ;;  %s234_s7 = scalar_lea.sflag (!%p781_p3), [#allocation4], %s852_s22 }
  0x2a   : > { %s858_s13 = scalar_lea.vmem (!%p781_p3), [#allocation3], %s477_s6 }
  0x2d   : > { %691 = dma.done.wait (%p814_p12), %s234_s7, 128  }
  0x2e   : > { %693 = vsyncadd (%p814_p12), %s234_s7, 4294967168 }
  0x2f   : > { %695 = dma.done.wait (%p43_p1), [#allocation7], 4096  }
  0x30   : > { %697 = vsyncadd (%p43_p1), [#allocation7], 4294963200  ;;  %v292_v0 = vld [vmem:[#allocation6 + $0x78] sm:$0xff]  ;;  %v291_v1 = vld [vmem:[#allocation6 + $0x70] sm:$0xff]  ;;  %s482_s8 = sshll.u32 %s776_s25, 3  ;;  %s274_s28 = scalar_lea.vmem [#allocation9], %s477_s6 }
  0x31   : > { %297 = vmatpush.msra.mxu0 %v292_v0  ;;  %v290_v2 = vld [vmem:[#allocation6 + $0x68] sm:$0xff]  ;;  %v289_v3 = vld [vmem:[#allocation6 + $0x60] sm:$0xff]  ;;  %v334_v4 = vld [vmem:[#allocation8 + $0x78] sm:$0xff]  ;;  %s375_s11 = scalar_lea.hbm %s915_s5, %s482_s8  ;;  %s377_s29 = sshll.u32 %s274_s28, 4  ;;  %s378_s29 = int_to_ptr.vmem [resolvable:$true] %s377_s29 }
  0x32   : > { %v288_v5 = vld [vmem:[#allocation6 + $0x58] sm:$0xff]  ;;  %335 = vmatpush.msra.mxu1 %v334_v4  ;;  %v333_v6 = vld [vmem:[#allocation8 + $0x70] sm:$0xff]  ;;  %v332_v7 = vld [vmem:[#allocation8 + $0x68] sm:$0xff]  ;;  %s379_s30 = sshll.u32 %s375_s11, 4  ;;  %s365_s16 = scalar_lea.sflag [#allocation5], %s852_s22  ;;  %s380_s30 = int_to_ptr.hbm [resolvable:$true] %s379_s30 }
  0x33   : > { %298 = vmatpush.msra.mxu0 %v291_v1  ;;  %v287_v8 = vld [vmem:[#allocation6 + $0x50] sm:$0xff]  ;;  %v331_v9 = vld [vmem:[#allocation8 + $0x60] sm:$0xff]  ;;  %v286_v10 = vld [vmem:[#allocation6 + $0x48] sm:$0xff]  ;;  %s660_s25 = sshra.s32 %s380_s30, 4  ;;  %s666_s17 = scalar_lea.hbm %s915_s5, 16  ;;  %s661_s25 = int_to_ptr.hbm [resolvable:$true] %s660_s25 }
  0x34   : > { %336 = vmatpush.msra.mxu1 %v333_v6  ;;  %v330_v11 = vld [vmem:[#allocation8 + $0x58] sm:$0xff]  ;;  %v285_v12 = vld [vmem:[#allocation6 + $0x40] sm:$0xff]  ;;  %v329_v13 = vld [vmem:[#allocation8 + $0x50] sm:$0xff]  ;;  %s662_s7 = scalar_lea.hbm %s661_s25, 8  ;;  %p667_p12 = scmp.lt.s32.totalorder %s661_s25, %s915_s5 }
  0x35   : > { %299 = vmatpush.msra.mxu0 %v290_v2  ;;  %v284_v14 = vld [vmem:[#allocation6 + $0x38] sm:$0xff]  ;;  %v328_v15 = vld [vmem:[#allocation8 + $0x48] sm:$0xff]  ;;  %v283_v16 = vld [vmem:[#allocation6 + $0x30] sm:$0xff]  ;;  %p663_p1 = scmp.ne.s32.totalorder %s661_s25, %s662_s7  ;;  %p668_p7 = scmp.lt.s32.totalorder %s666_s17, %s662_s7 }
  0x36   : > { %337 = vmatpush.msra.mxu1 %v332_v7  ;;  %v327_v17 = vld [vmem:[#allocation8 + $0x40] sm:$0xff]  ;;  %v282_v18 = vld [vmem:[#allocation6 + $0x28] sm:$0xff]  ;;  %v326_v19 = vld [vmem:[#allocation8 + $0x38] sm:$0xff] }
  0x37   : > { %300 = vmatpush.msra.mxu0 %v289_v3  ;;  %v281_v20 = vld [vmem:[#allocation6 + $0x20] sm:$0xff]  ;;  %v325_v21 = vld [vmem:[#allocation8 + $0x30] sm:$0xff]  ;;  %v280_v22 = vld [vmem:[#allocation6 + $0x18] sm:$0xff]  ;;  %p664_p3 = pnand %p663_p1, %p821_p4  ;;  %p669_p8 = por %p668_p7, %p667_p12 }
  0x38   : > { %338 = vmatpush.msra.mxu1 %v331_v9  ;;  %v324_v23 = vld [vmem:[#allocation8 + $0x28] sm:$0xff]  ;;  %v279_v24 = vld [vmem:[#allocation6 + $0x10] sm:$0xff]  ;;  %v323_v25 = vld [vmem:[#allocation8 + $0x20] sm:$0xff] }
  0x39   : > { %301 = vmatpush.msra.mxu0 %v288_v5  ;;  %v278_v26 = vld [vmem:[#allocation6 + $0x8] sm:$0xff]  ;;  %v322_v27 = vld [vmem:[#allocation8 + $0x18] sm:$0xff]  ;;  %v277_v28 = vld [vmem:[#allocation6] sm:$0xff]  ;;  %p665_p5 = pneg %p664_p3 }
  0x3a   : > { %339 = vmatpush.msra.mxu1 %v330_v11  ;;  %v276_v29 = vld [vmem:[%s858_s13] sm:$0xff]  ;;  %v320_v31 = vld [vmem:[#allocation8 + $0x8] sm:$0xff]  ;;  %v319_v32 = vld [vmem:[#allocation8] sm:$0xff] }
  0x3b   : > { %302 = vmatpush.msra.mxu0 %v287_v8  ;;  %v321_v30 = vld [vmem:[#allocation8 + $0x10] sm:$0xff]  ;;  %p670_p9 = pnand %p669_p8, %p665_p5 }
  0x3c   : > { %340 = vmatpush.msra.mxu1 %v329_v13  ;;  %v554_v33 = vld [vmem:[%s912_s2] ss:$0 sm:$0xff] }
  0x3d   : > { %303 = vmatpush.msra.mxu0 %v286_v10  ;;  %v555_v37 = vld [vmem:[%s914_s4] ss:$0 sm:$0xff] }
  0x3e   : > { %341 = vmatpush.msra.mxu1 %v328_v15 }
  0x3f   : > { %304 = vmatpush.msra.mxu0 %v285_v12 }
  0x40   : > { %342 = vmatpush.msra.mxu1 %v327_v17 }
  0x41   : > { %305 = vmatpush.msra.mxu0 %v284_v14 }
  0x42   : > { %343 = vmatpush.msra.mxu1 %v326_v19 }
  0x43   : > { %306 = vmatpush.msra.mxu0 %v283_v16 }
  0x44   : > { %344 = vmatpush.msra.mxu1 %v325_v21 }
  0x45   : > { %307 = vmatpush.msra.mxu0 %v282_v18 }
  0x46   : > { %345 = vmatpush.msra.mxu1 %v324_v23 }
  0x47   : > { %308 = vmatpush.msra.mxu0 %v281_v20 }
  0x48   : > { %346 = vmatpush.msra.mxu1 %v323_v25 }
  0x49   : > { %309 = vmatpush.msra.mxu0 %v280_v22 }
  0x4a   : > { %347 = vmatpush.msra.mxu1 %v322_v27 }
  0x4b   : > { %310 = vmatpush.msra.mxu0 %v279_v24 }
  0x4c   : > { %348 = vmatpush.msra.mxu1 %v321_v30 }
  0x4d   : > { %311 = vmatpush.msra.mxu0 %v278_v26 }
  0x4e   : > { %349 = vmatpush.msra.mxu1 %v320_v31 }
  0x4f   : > { %312 = vmatpush.msra.mxu0 %v277_v28 }
  0x50   : > { %313 = vmatmul.f32.vlgmr.msra.gmra.mxu0 %v276_v29  ;;  %350 = vmatpush.msra.mxu1 %v319_v32 }
  0xcd   : > { %v314_v34 = vpop.f32.mrf.mxu0 }
  0xce   : > { %v315_v35 = vadd.f32 %v554_v33, %v314_v34 }
  0xd0   : > { %v317_v36 = vmax.f32 %v315_v35, 0.0 }
  0xd2   : > { %351 = vmatmul.f32.vlgmr.msra.gmra.mxu1 %v317_v36 }
 0x14f   : > { %v352_v38 = vpop.f32.mrf.mxu1 }
 0x150   : > { %v362_v39 = vadd.f32 %v555_v37, %v352_v38 }
 0x152   : > { %363 = vst [vmem:[%s274_s28] sm:$0xff] %v362_v39 }
 0x153   : > { %673 = shalt.err (!%p670_p9)
}
 0x154   : > { %495 = dma.vmem_to_hbm [thread:$0]  (%p821_p4), %s378_s29, 128, %s380_s30, %s365_s16  }
 0x155 PF: > { %s391_s22 = sand.u32 1, %s704_s18   ;;  %p922_p10 = scmp.ge.s32.totalorder %s716_s21, 2 }
 0x156   : > { %s392_s9 = scalar_lea.sflag [#allocation5], %s391_s22 }
 0x157   : > { %p509_p13 = pnand %p922_p10, %p825_p6 }
 0x159   : > { %p510_p11 = pneg %p509_p13 }
 0x15b   : > { %699 = dma.done.wait (%p510_p11), %s392_s9, 128  }
 0x15c   : > { %701 = vsyncadd (%p510_p11), %s392_s9, 4294967168  ;;  %p19_p0 = scmp.ge.s32.totalorder %s795_s12, 4   ;;  %s923_s18 = smov %s708_s19 }
 0x15d   : > { %s924_s19 = smov %s712_s20  ;;  %s925_s20 = smov %s806_s15 }
 0x15e   : > { %s926_s21 = smov %s795_s12  ;;  %21 = sbr.rel (!%p19_p0) target bundleno = 6 (0x6), region = 93 }
 0x163   :  { %398 = vsyncpa [#allocation4], 1 }
 0x164   :  { %400 = vsyncpa [#allocation4 + $0x1], 1 }
 0x165   :  { %401 = vsyncpa [#allocation7], 1 }
 0x166   :  { %402 = vsyncpa [#allocation5], 1 }
 0x167   :  { %404 = vsyncpa [#allocation5 + $0x1], 1 }

</bundles_post_ra>
